<compile_context>
chip_gen: v7x
topology: tpu7x:2x2x1
jax: 0.10.0
libtpu: 0.0.40
codegen_flags: <defaults>
</compile_context>

<pallas_src>
import functools

import jax
import jax.numpy as jnp
from jax.experimental import pallas as pl
from jax.experimental.pallas import tpu as pltpu


def _round_up(x, m):
    return ((x + m - 1) // m) * m


# ----------------------------- Pallas kernel --------------------------------
def _convlayer_kernel(p_ref, w_ref, b_ref, o_ref, *, m_tile):
    # p_ref: (4, M_TILE, CKK) bf16  im2col patches, one slab per 2x2 pool offset
    # w_ref: (CKK, C_PAD)     bf16  conv weight, (ci,kh,kw) x zero-padded C_out
    # b_ref: (1, C_PAD)       f32   conv bias (zero-padded)
    # o_ref: (M_TILE, C_PAD)  f32   pooled+activated output tile (lane-dense)
    p = p_ref[...]
    ckk = p.shape[-1]
    # Stack the 4 pool offsets along M -> a single MXU matmul per grid step.
    p2 = p.reshape(4 * m_tile, ckk)
    a = jnp.dot(p2, w_ref[...], preferred_element_type=jnp.float32)  # (4*M_TILE, C_PAD) f32

    # MaxPool2d(2): elementwise max over the 4 offset slabs (VPU). tanh is
    # monotone, so max-before-tanh is mathematically identical to the module's
    # Tanh -> MaxPool order, and does 1/4 of the tanh + bias work.
    m = a[0:m_tile]
    for q in range(1, 4):
        m = jnp.maximum(m, a[q * m_tile:(q + 1) * m_tile])

    o_ref[...] = jnp.tanh(m + b_ref[...]).astype(o_ref.dtype)


# ------------------------------ JAX wrapper ----------------------------------
def _im2col_pool_grouped_flat(x, K):
    """x: NCHW f32. Returns patches (4, M, CKK) with M = N*PH*PW, grouped by
    2x2 pool-window offset, plus (PH, PW). CKK flatten order is (ci, kh, kw),
    matching weight.reshape(C_out, C_in*K*K)."""
    N, C, H, W = x.shape
    OH, OW = H - K + 1, W - K + 1
    PH, PW = OH // 2, OW // 2  # MaxPool2d(2), floor mode

    cols = []
    for kh in range(K):
        for kw in range(K):
            cols.append(x[:, :, kh:kh + OH, kw:kw + OW])  # (N, C, OH, OW)
    p = jnp.stack(cols, axis=2)                  # (N, C, K*K, OH, OW)
    p = p.reshape(N, C * K * K, OH, OW)          # flatten order (ci, kh, kw)
    p = p[:, :, : 2 * PH, : 2 * PW]              # pool floor-truncation
    p = p.reshape(N, C * K * K, PH, 2, PW, 2)
    p = jnp.transpose(p, (3, 5, 0, 2, 4, 1))     # (2, 2, N, PH, PW, CKK)
    p = p.reshape(4, N * PH * PW, C * K * K)     # (4, M, CKK)
    return p, (PH, PW)


@functools.partial(jax.jit, static_argnames=("kernel_size", "tile_m"))
def conv_layer_forward(x, weight, bias, kernel_size=3, tile_m=256):
    """Equivalent of ConvLayer.forward. x: NCHW f32, weight: (C_out, C_in, K, K)."""
    N, C_in, H, W = x.shape
    C_out = weight.shape[0]
    K = kernel_size
    CKK = C_in * K * K

    patches, (PH, PW) = _im2col_pool_grouped_flat(x, K)   # (4, M, CKK) f32
    M = N * PH * PW

    # Lane/sublane-friendly padding. M_TILE bounds per-step VMEM explicitly
    # (fits v7x); C_PAD makes the output stores lane-dense.
    M_TILE = min(int(tile_m), _round_up(M, 16))
    M_pad = _round_up(M, M_TILE)
    C_PAD = _round_up(C_out, 128)

    # bf16 MXU operands; all post-matmul math stays f32 in the kernel.
    patches = jnp.pad(patches, ((0, 0), (0, M_pad - M), (0, 0))).astype(jnp.bfloat16)
    w_mat = weight.reshape(C_out, CKK).T.astype(jnp.bfloat16)          # (CKK, C_out)
    w_mat = jnp.pad(w_mat, ((0, 0), (0, C_PAD - C_out)))               # (CKK, C_PAD)
    b_mat = jnp.pad(bias.astype(jnp.float32).reshape(1, C_out),
                    ((0, 0), (0, C_PAD - C_out)))                      # (1, C_PAD)

    grid = (M_pad // M_TILE,)

    out = pl.pallas_call(
        functools.partial(_convlayer_kernel, m_tile=M_TILE),
        out_shape=jax.ShapeDtypeStruct((M_pad, C_PAD), jnp.float32),
        grid=grid,
        in_specs=[
            pl.BlockSpec((4, M_TILE, CKK), lambda i: (0, i, 0)),   # patches tile
            pl.BlockSpec((CKK, C_PAD), lambda i: (0, 0)),          # weights (resident)
            pl.BlockSpec((1, C_PAD), lambda i: (0, 0)),            # bias (resident)
        ],
        out_specs=pl.BlockSpec((M_TILE, C_PAD), lambda i: (i, 0)),
        compiler_params=pltpu.CompilerParams(
            dimension_semantics=("parallel",),
            vmem_limit_bytes=32 * 1024 * 1024,
        ),
    )(patches, w_mat, b_mat)

    out = out[:M, :C_out]                      # strip M / channel padding
    out = out.reshape(N, PH, PW, C_out)
    out = jnp.transpose(out, (0, 3, 1, 2))     # back to NCHW (tiny tensor)
    return out


# ------------------------- deterministic init --------------------------------
def orthogonal_weight(key, rows, cols, gain=1.0):
    """Orthogonal init (QR of a Gaussian), matching nn.init.orthogonal_ semantics."""
    big, small = max(rows, cols), min(rows, cols)
    a = jax.random.normal(key, (big, small), dtype=jnp.float32)
    q, r = jnp.linalg.qr(a)
    q = q * jnp.sign(jnp.diag(r))[None, :]
    if rows < cols:
        q = q.T
    return (gain * q[:rows, :cols]).astype(jnp.float32)


# ------------------------- references for validation --------------------------
def reference_forward(x, weight, bias):
    """Full-f32 PyTorch-semantics reference (Conv2d -> Tanh -> MaxPool2d(2))."""
    conv = jax.lax.conv_general_dilated(
        x, weight, window_strides=(1, 1), padding="VALID",
        dimension_numbers=("NCHW", "OIHW", "NCHW"),
        precision=jax.lax.Precision.HIGHEST)
    conv = conv + bias[None, :, None, None]
    t = jnp.tanh(conv)
    return jax.lax.reduce_window(
        t, -jnp.inf, jax.lax.max, (1, 1, 2, 2), (1, 1, 2, 2), "VALID")


def kernel_math_reference(x, weight, bias, K=3):
    """Pure-JAX replica of the exact kernel math (bf16 matmul operands, f32
    accumulation, max-then-tanh). Used for a tight-tolerance layout check."""
    N, C_in = x.shape[0], x.shape[1]
    C_out = weight.shape[0]
    CKK = C_in * K * K
    patches, (PH, PW) = _im2col_pool_grouped_flat(x, K)         # (4, M, CKK) f32
    p_bf = patches.astype(jnp.bfloat16)
    w_bf = weight.reshape(C_out, CKK).T.astype(jnp.bfloat16)    # (CKK, C_out)
    a = jnp.einsum("qmk,kc->qmc", p_bf, w_bf,
                   preferred_element_type=jnp.float32)          # (4, M, C_out)
    out = jnp.tanh(jnp.max(a, axis=0) + bias[None, :].astype(jnp.float32))
    out = out.reshape(N, PH, PW, C_out)
    return jnp.transpose(out, (0, 3, 1, 2))


if __name__ == "__main__":
    # small shapes consistent with the module
    N, C_in, H, W = 2, 4, 16, 16
    C_out, K = 8, 3

    key = jax.random.PRNGKey(0)
    k_x, k_w = jax.random.split(key)

    x = jax.random.normal(k_x, (N, C_in, H, W), dtype=jnp.float32)
    w_flat = orthogonal_weight(k_w, C_out, C_in * K * K, gain=1.0)
    weight = w_flat.reshape(C_out, C_in, K, K)
    bias = jnp.zeros((C_out,), dtype=jnp.float32)  # nn.init.constant_(bias, 0)

    out = jax.block_until_ready(conv_layer_forward(x, weight, bias, kernel_size=K))

    PH, PW = (H - K + 1) // 2, (W - K + 1) // 2
    assert out.shape == (N, C_out, PH, PW)

    # Tight check: identical math path (bf16 matmul, f32 accum) -> catches any
    # layout / indexing / pooling bug at near-ULP tolerance.
    ref_tight = jax.block_until_ready(kernel_math_reference(x, weight, bias, K))
    assert jnp.allclose(out, ref_tight, atol=1e-4, rtol=1e-4), \
        "mismatch vs bf16-matmul kernel-math reference (layout/indexing bug)"

    # Loose check: full-f32 PyTorch-semantics reference; tolerance is the bf16
    # input-rounding budget only.
    ref_f32 = jax.block_until_ready(reference_forward(x, weight, bias))
    assert out.shape == ref_f32.shape
    assert jnp.allclose(out, ref_f32, atol=2e-2, rtol=2e-2), \
        "mismatch vs f32 reference beyond bf16 rounding budget"

    print("KERNEL_OK")
</pallas_src>

<mosaic_0001>
module attributes {stable_mosaic.version = 11 : i64} {
  func.func @_convlayer_kernel(%arg0: i32, %arg1: memref<4x112x36xbf16, #tpu.memory_space<vmem>>, %arg2: memref<36x128xbf16, #tpu.memory_space<vmem>>, %arg3: memref<1x128xf32, #tpu.memory_space<vmem>>, %arg4: memref<112x128xf32, #tpu.memory_space<vmem>>) attributes {dimension_semantics = [#tpu.dimension_semantics<parallel>], iteration_bounds = array<i64: 1>, scalar_prefetch = 0 : i64, scratch_operands = 0 : i64, tpu.core_type = #tpu.core_type<tc>, window_params = [{transform_indices = @transform_0, window_bounds = array<i64: 4, 112, 36>}, {pipeline_mode = #tpu.pipeline_mode<synchronous>, transform_indices = @transform_1, window_bounds = array<i64: 36, 128>}, {pipeline_mode = #tpu.pipeline_mode<synchronous>, transform_indices = @transform_2, window_bounds = array<i64: 1, 128>}, {transform_indices = @transform_3, window_bounds = array<i64: 112, 128>}]} {
    %c0 = arith.constant 0 : index
    %c0_0 = arith.constant 0 : index
    %c0_1 = arith.constant 0 : index
    %0 = vector.load %arg1[%c0, %c0_0, %c0_1] : memref<4x112x36xbf16, #tpu.memory_space<vmem>>, vector<4x112x36xbf16>
    %1 = vector.shape_cast %0 : vector<4x112x36xbf16> to vector<448x36xbf16>
    %c0_2 = arith.constant 0 : index
    %c0_3 = arith.constant 0 : index
    %2 = vector.load %arg2[%c0_2, %c0_3] : memref<36x128xbf16, #tpu.memory_space<vmem>>, vector<36x128xbf16>
    %cst = arith.constant dense<0.000000e+00> : vector<448x128xf32>
    %3 = tpu.matmul %1, %2, %cst {dimension_numbers = #tpu.dot_dimension_numbers<[1], [0], [0], [1], [0, 0, 1, 1], [], []>} : vector<448x36xbf16>, vector<36x128xbf16>, vector<448x128xf32> -> vector<448x128xf32>
    %4 = vector.extract_strided_slice %3 {offsets = [0, 0], sizes = [112, 128], strides = [1, 1]} : vector<448x128xf32> to vector<112x128xf32>
    %5 = vector.extract_strided_slice %3 {offsets = [112, 0], sizes = [112, 128], strides = [1, 1]} : vector<448x128xf32> to vector<112x128xf32>
    %6 = arith.maximumf %4, %5 : vector<112x128xf32>
    %7 = vector.extract_strided_slice %3 {offsets = [224, 0], sizes = [112, 128], strides = [1, 1]} : vector<448x128xf32> to vector<112x128xf32>
    %8 = arith.maximumf %6, %7 : vector<112x128xf32>
    %9 = vector.extract_strided_slice %3 {offsets = [336, 0], sizes = [112, 128], strides = [1, 1]} : vector<448x128xf32> to vector<112x128xf32>
    %10 = arith.maximumf %8, %9 : vector<112x128xf32>
    %c0_4 = arith.constant 0 : index
    %c0_5 = arith.constant 0 : index
    %11 = vector.load %arg3[%c0_4, %c0_5] : memref<1x128xf32, #tpu.memory_space<vmem>>, vector<1x128xf32>
    %12 = vector.broadcast %11 : vector<1x128xf32> to vector<112x128xf32>
    %13 = arith.addf %10, %12 : vector<112x128xf32>
    %14 = math.tanh %13 : vector<112x128xf32>
    %c0_6 = arith.constant 0 : index
    %c0_7 = arith.constant 0 : index
    %15 = vector.load %arg4[%c0_6, %c0_7] : memref<112x128xf32, #tpu.memory_space<vmem>>, vector<112x128xf32>
    tpu.vector_store %arg4[%c0_6, %c0_7], %14 {strides = array<i32>} : memref<112x128xf32, #tpu.memory_space<vmem>>, vector<112x128xf32>,
    return
  }
  func.func @transform_0(%arg0: i32) -> (i32, i32, i32) {
    %c0_i32 = arith.constant 0 : i32
    %c0_i32_0 = arith.constant 0 : i32
    %c0_i32_1 = arith.constant 0 : i32
    return %c0_i32, %arg0, %c0_i32_0 : i32, i32, i32
  }
  func.func @transform_1(%arg0: i32) -> (i32, i32) {
    %c0_i32 = arith.constant 0 : i32
    %c0_i32_0 = arith.constant 0 : i32
    %c0_i32_1 = arith.constant 0 : i32
    return %c0_i32, %c0_i32_0 : i32, i32
  }
  func.func @transform_2(%arg0: i32) -> (i32, i32) {
    %c0_i32 = arith.constant 0 : i32
    %c0_i32_0 = arith.constant 0 : i32
    %c0_i32_1 = arith.constant 0 : i32
    return %c0_i32, %c0_i32_0 : i32, i32
  }
  func.func @transform_3(%arg0: i32) -> (i32, i32) {
    %c0_i32 = arith.constant 0 : i32
    %c0_i32_0 = arith.constant 0 : i32
    return %arg0, %c0_i32 : i32, i32
  }
}

</mosaic_0001>

<bundles_post_ra>
// kernel: conv_layer_forward.1
= control target key start
LH: loop header
LB: loop body
LE: loop exit
PB: predicated region body
PF: predicated region fallthrough
CT: control target
= control target key end

     0   :  { %vm231_vm0 = vcmask 293888   ;;  %vm316_vm1 = vcmask 1041408   ;;  %s1139_s1 = inlined_call_operand.vmem [shape: bf16[36,128], index: 1, kind: input, shape index: {}]   ;;  %s1140_s0 = inlined_call_operand.vmem [shape: bf16[4,112,36], index: 0, kind: input, shape index: {}]   ;;  %s1141_s2 = inlined_call_operand.vmem [shape: f32[1,128], index: 2, kind: input, shape index: {}]   ;;  %s1142_s3 = inlined_call_operand.vmem [shape: f32[112,128], index: 3, kind: output, shape index: {}]  }
   0x1   :  { %v833_v0 = vld [vmem:[%s1139_s1] sm:$0xff]   ;;  %v834_v1 = vld [vmem:[%s1139_s1 + $0x8] sm:$0xff]   ;;  %v835_v2 = vld [vmem:[%s1139_s1 + $0x10] ss:$0 sps:$4 sm:$0x33]  }
   0x2   :  { %763 = vmatprep.subr.bf16.mxu0 %v833_v0  ;;  %825 = vmatprep.subr.bf16.mxu1 %v833_v0  ;;  %v836_v3 = vld [vmem:[%s1140_s0] sm:$0xff]   ;;  %v838_v4 = vld [vmem:[%s1140_s0 + $0x70] sm:$0xff]   ;;  %v318_v5 = vsel %vm316_vm1, %v835_v2, 0  ;;  %v837_v6 = vld [vmem:[%s1140_s0 + $0x8] sm:$0xff]  }
   0x3   :  { %764 = vmatpush3.bf16.msra.mxu0 %v833_v0  ;;  %828 = vmatpush3.bf16.msra.mxu1 %v833_v0  ;;  %v839_v7 = vld [vmem:[%s1140_s0 + $0x78] sm:$0xff]   ;;  %v840_v8 = vld [vmem:[%s1140_s0 + $0x10] sm:$0xff]   ;;  %v842_v9 = vld [vmem:[%s1140_s0 + $0x80] sm:$0xff]  }
   0x4   :  { %765 = vmatprep.subr.bf16.mxu0 %v834_v1  ;;  %826 = vmatprep.subr.bf16.mxu1 %v834_v1  ;;  %v841_v10 = vld [vmem:[%s1140_s0 + $0x18] sm:$0xff]   ;;  %v843_v11 = vld [vmem:[%s1140_s0 + $0x88] sm:$0xff]   ;;  %v844_v12 = vld [vmem:[%s1140_s0 + $0x20] sm:$0xff]  }
   0x5   :  { %769 = vmatprep.mubr.msk.bf16.mxu0 %vm231_vm0, %v836_v3  ;;  %797 = vmatprep.mubr.msk.bf16.mxu1 %vm231_vm0, %v838_v4  ;;  %v846_v13 = vld [vmem:[%s1140_s0 + $0x90] sm:$0xff]   ;;  %v845_v14 = vld [vmem:[%s1140_s0 + $0x28] sm:$0xff]   ;;  %v847_v15 = vld [vmem:[%s1140_s0 + $0x98] sm:$0xff]  }
   0x6   :  { %v848_v16 = vld [vmem:[%s1140_s0 + $0x30] sm:$0xff]   ;;  %v850_v17 = vld [vmem:[%s1140_s0 + $0xa0] sm:$0xff]   ;;  %v849_v18 = vld [vmem:[%s1140_s0 + $0x38] sm:$0xff]  }
   0x7   :  { %766 = vmatpush3.bf16.msra.mxu0 %v834_v1  ;;  %829 = vmatpush3.bf16.msra.mxu1 %v834_v1  ;;  %v851_v19 = vld [vmem:[%s1140_s0 + $0xa8] sm:$0xff]   ;;  %v852_v20 = vld [vmem:[%s1140_s0 + $0x40] sm:$0xff]   ;;  %v854_v21 = vld [vmem:[%s1140_s0 + $0xb0] sm:$0xff]  }
   0x8   :  { %831 = vmatprep.subr.msk.bf16.mxu0 %vm316_vm1, %v835_v2  ;;  %832 = vmatprep.subr.msk.bf16.mxu1 %vm316_vm1, %v835_v2  ;;  %v853_v22 = vld [vmem:[%s1140_s0 + $0x48] sm:$0xff]   ;;  %v855_v23 = vld [vmem:[%s1140_s0 + $0xb8] sm:$0xff]   ;;  %v856_v24 = vld [vmem:[%s1140_s0 + $0x50] sm:$0xff]  }
   0x9   :  { %v858_v25 = vld [vmem:[%s1140_s0 + $0xc0] sm:$0xff]   ;;  %v857_v26 = vld [vmem:[%s1140_s0 + $0x58] sm:$0xff]   ;;  %v859_v27 = vld [vmem:[%s1140_s0 + $0xc8] sm:$0xff]  }
   0xa   :  { %v860_v28 = vld [vmem:[%s1140_s0 + $0x60] sm:$0xff]   ;;  %v862_v29 = vld [vmem:[%s1140_s0 + $0xd0] sm:$0xff]   ;;  %v861_v30 = vld [vmem:[%s1140_s0 + $0x68] sm:$0xff]  }
   0xb   :  { %768 = vmatpush3.bf16.msra.mxu0 %v318_v5  ;;  %830 = vmatpush3.bf16.msra.mxu1 %v318_v5  ;;  %v863_v31 = vld [vmem:[%s1140_s0 + $0xd8] sm:$0xff]   ;;  %v1066_v3 = vld [vmem:[%s1141_s2] ss:$0 sm:$0xff] }
   0xe   :  { %770 = vmatmul.mubr.msk.bf16.vlgmr.msra.gmra.mrb[0].mxu0 %vm231_vm0, %v837_v6  ;;  %798 = vmatmul.mubr.msk.bf16.vlgmr.msra.gmra.mrb[0].mxu1 %vm231_vm0, %v839_v7 }
   0xf   :  { %773 = vmatprep.mubr.msk.bf16.mxu0 %vm231_vm0, %v840_v8  ;;  %801 = vmatprep.mubr.msk.bf16.mxu1 %vm231_vm0, %v842_v9 }
  0x16   :  { %774 = vmatmul.mubr.msk.bf16.gmra.mrb[4].mxu0 %vm231_vm0, %v841_v10  ;;  %802 = vmatmul.mubr.msk.bf16.gmra.mrb[4].mxu1 %vm231_vm0, %v843_v11 }
  0x17   :  { %777 = vmatprep.mubr.msk.bf16.mxu0 %vm231_vm0, %v844_v12  ;;  %805 = vmatprep.mubr.msk.bf16.mxu1 %vm231_vm0, %v846_v13 }
  0x1e   :  { %778 = vmatmul.mubr.msk.bf16.gmra.mrb[8].mxu0 %vm231_vm0, %v845_v14  ;;  %806 = vmatmul.mubr.msk.bf16.gmra.mrb[8].mxu1 %vm231_vm0, %v847_v15 }
  0x1f   :  { %781 = vmatprep.mubr.msk.bf16.mxu0 %vm231_vm0, %v848_v16  ;;  %809 = vmatprep.mubr.msk.bf16.mxu1 %vm231_vm0, %v850_v17 }
  0x26   :  { %782 = vmatmul.mubr.msk.bf16.gmra.mrb[12].mxu0 %vm231_vm0, %v849_v18  ;;  %810 = vmatmul.mubr.msk.bf16.gmra.mrb[12].mxu1 %vm231_vm0, %v851_v19 }
  0x27   :  { %785 = vmatprep.mubr.msk.bf16.mxu0 %vm231_vm0, %v852_v20  ;;  %813 = vmatprep.mubr.msk.bf16.mxu1 %vm231_vm0, %v854_v21 }
  0x2e   :  { %786 = vmatmul.mubr.msk.bf16.gmra.mrb[16].mxu0 %vm231_vm0, %v853_v22  ;;  %814 = vmatmul.mubr.msk.bf16.gmra.mrb[16].mxu1 %vm231_vm0, %v855_v23 }
  0x2f   :  { %789 = vmatprep.mubr.msk.bf16.mxu0 %vm231_vm0, %v856_v24  ;;  %817 = vmatprep.mubr.msk.bf16.mxu1 %vm231_vm0, %v858_v25 }
  0x36   :  { %790 = vmatmul.mubr.msk.bf16.gmra.mrb[20].mxu0 %vm231_vm0, %v857_v26  ;;  %818 = vmatmul.mubr.msk.bf16.gmra.mrb[20].mxu1 %vm231_vm0, %v859_v27 }
  0x37   :  { %793 = vmatprep.mubr.msk.bf16.mxu0 %vm231_vm0, %v860_v28  ;;  %821 = vmatprep.mubr.msk.bf16.mxu1 %vm231_vm0, %v862_v29 }
  0x3e   :  { %794 = vmatmul.mubr.msk.bf16.gmra.mrb[24].mxu0 %vm231_vm0, %v861_v30  ;;  %822 = vmatmul.mubr.msk.bf16.gmra.mrb[24].mxu1 %vm231_vm0, %v863_v31 }
  0xe1   :  { %v771_v32 = vpop.f32.mrb[0].mxu0  ;;  %v799_v33 = vpop.f32.mrb[0].mxu1 }
  0xe2   :  { %v354_v34 = vpop.f32.mrb[1].mxu0  ;;  %v466_v35 = vpop.f32.mrb[1].mxu1 }
  0xe3   :  { %v772_v36 = vpop.f32.mrb[2].mxu0  ;;  %v800_v37 = vpop.f32.mrb[2].mxu1 }
  0xe4   :  { %v357_v38 = vpop.f32.mrb[3].mxu0  ;;  %v469_v39 = vpop.f32.mrb[3].mxu1 }
  0xe9   :  { %v1033_v40 = vpop.f32.mrb[4].mxu0  ;;  %v1035_v41 = vpop.f32.mrb[4].mxu1 }
  0xea   :  { %v370_v42 = vpop.f32.mrb[5].mxu0  ;;  %v482_v43 = vpop.f32.mrb[5].mxu1 }
  0xeb   :  { %v1037_v44 = vpop.f32.mrb[6].mxu0  ;;  %v1039_v45 = vpop.f32.mrb[6].mxu1 }
  0xec   :  { %v373_v46 = vpop.f32.mrb[7].mxu0  ;;  %v485_v47 = vpop.f32.mrb[7].mxu1 }
  0xf1   :  { %v1041_v48 = vpop.f32.mrb[8].mxu0  ;;  %v1043_v49 = vpop.f32.mrb[8].mxu1 }
  0xf2   :  { %v1045_v50 = vpop.f32.mrb[9].mxu0  ;;  %v498_v51 = vpop.f32.mrb[9].mxu1 }
  0xf3   :  { %v1047_v52 = vpop.f32.mrb[10].mxu0  ;;  %v1049_v53 = vpop.f32.mrb[10].mxu1 }
  0xf4   :  { %v1051_v54 = vpop.f32.mrb[11].mxu0  ;;  %v1053_v55 = vpop.f32.mrb[11].mxu1 }
  0xf9   :  { %v783_v56 = vpop.f32.mrb[12].mxu0  ;;  %v811_v57 = vpop.f32.mrb[12].mxu1 }
  0xfa   :  { %v577_v58 = vmax.f32 %v354_v34, %v783_v56  ;;  %v1055_v59 = vpop.f32.mrb[13].mxu0  ;;  %v1057_v60 = vpop.f32.mrb[13].mxu1 }
  0xfb   :  { %v784_v61 = vpop.f32.mrb[14].mxu0  ;;  %v812_v62 = vpop.f32.mrb[14].mxu1 }
  0xfc   :  { %v591_v63 = vmax.f32 %v577_v58, %v466_v35  ;;  %v578_v0 = vmax.f32 %v357_v38, %v784_v61  ;;  %v1059_v1 = vpop.f32.mrb[15].mxu0  ;;  %v1061_v2 = vpop.f32.mrb[15].mxu1 }
  0xfe   :  { %v605_v4 = vmax.f32 %v591_v63, %v811_v57  ;;  %v592_v5 = vmax.f32 %v578_v0, %v469_v39 }
 0x100   :  { %v626_v6 = vadd.f32 %v1066_v3, %v605_v4  ;;  %v606_v7 = vmax.f32 %v592_v5, %v812_v62 }
 0x101   :  { %v787_v8 = vpop.f32.mrb[16].mxu0  ;;  %v815_v9 = vpop.f32.mrb[16].mxu1 }
 0x102   :  { %864 = vtanh.f32 %v626_v6  ;;  %v627_v10 = vadd.f32 %v1066_v3, %v606_v7  ;;  %v581_v11 = vmax.f32 %v370_v42, %v787_v8  ;;  %v418_v12 = vpop.f32.mrb[17].mxu0  ;;  %v530_v13 = vpop.f32.mrb[17].mxu1 }
 0x103   :  { %v579_v14 = vmax.f32 %v771_v32, %v418_v12  ;;  %v788_v15 = vpop.f32.mrb[18].mxu0  ;;  %v816_v16 = vpop.f32.mrb[18].mxu1 }
 0x104   :  { %866 = vtanh.f32 %v627_v10  ;;  %v595_v17 = vmax.f32 %v581_v11, %v482_v43  ;;  %v582_v18 = vmax.f32 %v373_v46, %v788_v15  ;;  %v421_v19 = vpop.f32.mrb[19].mxu0  ;;  %v533_v20 = vpop.f32.mrb[19].mxu1 }
 0x105   :  { %v593_v21 = vmax.f32 %v579_v14, %v799_v33  ;;  %v580_v22 = vmax.f32 %v772_v36, %v421_v19 }
 0x106   :  { %v609_v23 = vmax.f32 %v595_v17, %v815_v9  ;;  %v596_v24 = vmax.f32 %v582_v18, %v485_v47 }
 0x107   :  { %v607_v25 = vmax.f32 %v593_v21, %v530_v13  ;;  %v594_v26 = vmax.f32 %v580_v22, %v800_v37 }
 0x108   :  { %v630_v27 = vadd.f32 %v1066_v3, %v609_v23  ;;  %v610_v28 = vmax.f32 %v596_v24, %v816_v16 }
 0x109   :  { %v628_v29 = vadd.f32 %v1066_v3, %v607_v25  ;;  %v608_v30 = vmax.f32 %v594_v26, %v533_v20  ;;  %v791_v31 = vpop.f32.mrb[20].mxu0  ;;  %v819_v32 = vpop.f32.mrb[20].mxu1 }
 0x10a   :  { %868 = vtanh.f32 %v630_v27  ;;  %v631_v34 = vadd.f32 %v1066_v3, %v610_v28  ;;  %v585_v35 = vmax.f32 %v1045_v50, %v791_v31  ;;  %v434_v38 = vpop.f32.mrb[21].mxu0  ;;  %v546_v33 = vpop.f32.mrb[21].mxu1 }
 0x10b   :  { %870 = vtanh.f32 %v628_v29  ;;  %v629_v36 = vadd.f32 %v1066_v3, %v608_v30  ;;  %v583_v37 = vmax.f32 %v1033_v40, %v434_v38  ;;  %v792_v39 = vpop.f32.mrb[22].mxu0  ;;  %v820_v42 = vpop.f32.mrb[22].mxu1 }
 0x10c   :  { %v865_v43 = vpop.eup %864  ;;  %872 = vtanh.f32 %v631_v34  ;;  %v599_v46 = vmax.f32 %v585_v35, %v498_v51  ;;  %v586_v47 = vmax.f32 %v1051_v54, %v792_v39  ;;  %v437_v56 = vpop.f32.mrb[23].mxu0 }
 0x10d   :  { %v549_v57 = vpop.f32.mrb[23].mxu1  ;;  %654 = vst [vmem:[%s1142_s3] sm:$0xff] %v865_v43  ;;  %874 = vtanh.f32 %v629_v36  ;;  %v597_v50 = vmax.f32 %v583_v37, %v1035_v41  ;;  %v584_v58 = vmax.f32 %v1037_v44, %v437_v56 }
 0x10e   :  { %v867_v61 = vpop.eup %866  ;;  %v613_v40 = vmax.f32 %v599_v46, %v819_v32  ;;  %v600_v62 = vmax.f32 %v586_v47, %v1053_v55 }
 0x10f   :  { %655 = vst [vmem:[%s1142_s3 + $0x8] sm:$0xff] %v867_v61  ;;  %v611_v51 = vmax.f32 %v597_v50, %v546_v33  ;;  %v598_v54 = vmax.f32 %v584_v58, %v1039_v45 }
 0x110   :  { %v634_v63 = vadd.f32 %v1066_v3, %v613_v40  ;;  %v614_v0 = vmax.f32 %v600_v62, %v820_v42 }
 0x111   :  { %v632_v4 = vadd.f32 %v1066_v3, %v611_v51  ;;  %v612_v5 = vmax.f32 %v598_v54, %v549_v57  ;;  %v795_v41 = vpop.f32.mrb[24].mxu0  ;;  %v823_v6 = vpop.f32.mrb[24].mxu1 }
 0x112   :  { %876 = vtanh.f32 %v634_v63  ;;  %v635_v44 = vadd.f32 %v1066_v3, %v614_v0  ;;  %v589_v55 = vmax.f32 %v1055_v59, %v795_v41  ;;  %v450_v7 = vpop.f32.mrb[25].mxu0  ;;  %v562_v8 = vpop.f32.mrb[25].mxu1 }
 0x113   :  { %878 = vtanh.f32 %v632_v4  ;;  %v633_v9 = vadd.f32 %v1066_v3, %v612_v5  ;;  %v587_v45 = vmax.f32 %v1041_v48, %v450_v7  ;;  %v796_v10 = vpop.f32.mrb[26].mxu0  ;;  %v824_v11 = vpop.f32.mrb[26].mxu1 }
 0x114   :  { %v869_v12 = vpop.eup %868  ;;  %880 = vtanh.f32 %v635_v44  ;;  %v603_v13 = vmax.f32 %v589_v55, %v1057_v60  ;;  %v590_v14 = vmax.f32 %v1059_v1, %v796_v10  ;;  %v453_v15 = vpop.f32.mrb[27].mxu0 }
 0x115   :  { %v565_v16 = vpop.f32.mrb[27].mxu1  ;;  %v871_v17 = vpop.eup %870  ;;  %658 = vst [vmem:[%s1142_s3 + $0x20] sm:$0xff] %v869_v12  ;;  %882 = vtanh.f32 %v633_v9  ;;  %v601_v59 = vmax.f32 %v587_v45, %v1043_v49  ;;  %v588_v48 = vmax.f32 %v1047_v52, %v453_v15 }
 0x116   :  { %v873_v18 = vpop.eup %872  ;;  %656 = vst [vmem:[%s1142_s3 + $0x10] sm:$0xff] %v871_v17  ;;  %v617_v60 = vmax.f32 %v603_v13, %v823_v6  ;;  %v604_v1 = vmax.f32 %v590_v14, %v1061_v2 }
 0x117   :  { %v875_v19 = vpop.eup %874  ;;  %659 = vst [vmem:[%s1142_s3 + $0x28] sm:$0xff] %v873_v18  ;;  %v615_v20 = vmax.f32 %v601_v59, %v562_v8  ;;  %v602_v21 = vmax.f32 %v588_v48, %v1049_v53 }
 0x118   :  { %657 = vst [vmem:[%s1142_s3 + $0x18] sm:$0xff] %v875_v19  ;;  %v638_v49 = vadd.f32 %v1066_v3, %v617_v60  ;;  %v618_v52 = vmax.f32 %v604_v1, %v824_v11 }
 0x119   :  { %v636_v22 = vadd.f32 %v1066_v3, %v615_v20  ;;  %v616_v23 = vmax.f32 %v602_v21, %v565_v16 }
 0x11a   :  { %884 = vtanh.f32 %v638_v49  ;;  %v639_v2 = vadd.f32 %v1066_v3, %v618_v52 }
 0x11b   :  { %886 = vtanh.f32 %v636_v22  ;;  %v637_v24 = vadd.f32 %v1066_v3, %v616_v23 }
 0x11c   :  { %v877_v25 = vpop.eup %876  ;;  %888 = vtanh.f32 %v639_v2 }
 0x11d   :  { %v879_v26 = vpop.eup %878  ;;  %662 = vst [vmem:[%s1142_s3 + $0x40] sm:$0xff] %v877_v25  ;;  %890 = vtanh.f32 %v637_v24 }
 0x11e   :  { %v881_v53 = vpop.eup %880  ;;  %660 = vst [vmem:[%s1142_s3 + $0x30] sm:$0xff] %v879_v26 }
 0x11f   :  { %v883_v27 = vpop.eup %882  ;;  %663 = vst [vmem:[%s1142_s3 + $0x48] sm:$0xff] %v881_v53 }
 0x120   :  { %661 = vst [vmem:[%s1142_s3 + $0x38] sm:$0xff] %v883_v27 }
 0x124   :  { %v885_v3 = vpop.eup %884 }
 0x125   :  { %v887_v28 = vpop.eup %886  ;;  %666 = vst [vmem:[%s1142_s3 + $0x60] sm:$0xff] %v885_v3 }
 0x126   :  { %v889_v29 = vpop.eup %888  ;;  %664 = vst [vmem:[%s1142_s3 + $0x50] sm:$0xff] %v887_v28 }
 0x127   :  { %v891_v30 = vpop.eup %890  ;;  %667 = vst [vmem:[%s1142_s3 + $0x68] sm:$0xff] %v889_v29 }
 0x128   :  { %665 = vst [vmem:[%s1142_s3 + $0x58] sm:$0xff] %v891_v30 }

</bundles_post_ra>
